<compile_context>
chip_gen: v6e
topology: v6e:2x2x1
jax: 0.10.0
libtpu: 0.0.40
codegen_flags: <defaults>
</compile_context>

<pallas_src>
import functools

import jax
import jax.numpy as jnp
from jax import lax
from jax.experimental import pallas as pl
from jax.experimental.pallas import tpu as pltpu


_VMEM_LIMIT = 48 * 1024 * 1024           # explicit scoped-VMEM limit (fits v7x's 64 MiB)
_TT_CANDIDATES = (2048, 1024, 512, 256, 128)


def _pick_time_tile(T, bytes_per_timestep, budget=20 * 1024 * 1024):
    """Largest time tile (multiple of 128, divides T) whose buffers fit the budget."""
    budget = max(budget, 4 * 1024 * 1024)
    for tt in _TT_CANDIDATES:
        if T % tt == 0 and tt * bytes_per_timestep <= budget:
            return tt
    return T   # small / awkward T: single time block (block dim == full dim is legal)


# ----------------------------------------------------------------------------
# alpha / constant skip
# ----------------------------------------------------------------------------
def _alpha_kernel_sum(alpha_ref, hj_ref, hi_ref, out_ref):
    # alpha_ref: (C, 1)   hj_ref / hi_ref / out_ref: (1, C, TT)
    out_ref[0] = alpha_ref[...] * hj_ref[0] + hi_ref[0]


def _alpha_kernel_only(alpha_ref, hj_ref, out_ref):
    out_ref[0] = alpha_ref[...] * hj_ref[0]


def alpha_skip(alpha, hj, hi=None, *, add_hi=True):
    """alpha: (C,), hj (and optionally hi): (B, C, T) -> (B, C, T)."""
    B, C, T = hj.shape
    dt = hj.dtype
    itemsize = dt.itemsize
    n_streams = 3 if add_hi else 2
    # bytes / timestep across all double-buffered blocks
    tt = _pick_time_tile(T, n_streams * 2 * C * itemsize)
    nT = T // tt

    alpha2d = alpha.reshape(C, 1).astype(dt)

    in_specs = [pl.BlockSpec((C, 1), lambda b, t: (0, 0)),
                pl.BlockSpec((1, C, tt), lambda b, t: (b, 0, t))]
    args = [alpha2d, hj]
    if add_hi:
        in_specs.append(pl.BlockSpec((1, C, tt), lambda b, t: (b, 0, t)))
        args.append(hi)

    cost = pl.CostEstimate(
        flops=int((2 if add_hi else 1) * B * C * T),
        transcendentals=0,
        bytes_accessed=int(n_streams * B * C * T * itemsize + C * itemsize))

    return pl.pallas_call(
        _alpha_kernel_sum if add_hi else _alpha_kernel_only,
        out_shape=jax.ShapeDtypeStruct((B, C, T), dt),
        grid_spec=pltpu.PrefetchScalarGridSpec(
            num_scalar_prefetch=0,
            grid=(B, nT),
            in_specs=in_specs,
            out_specs=pl.BlockSpec((1, C, tt), lambda b, t: (b, 0, t)),
        ),
        compiler_params=pltpu.CompilerParams(
            dimension_semantics=("parallel", "parallel"),
            vmem_limit_bytes=_VMEM_LIMIT),
        cost_estimate=cost,
    )(*args)


# ----------------------------------------------------------------------------
# conv skip  (1-D 'same' convolution over T, contraction over C on the MXU)
# ----------------------------------------------------------------------------
def _conv_skip_kernel(w_ref, b_ref, hj_hbm, *rest, kwidth, pad, tt, add_hi,
                      stack_taps):
    # w_ref:   (kwidth, Cout, Cin)           if not stack_taps
    #          (Cout, kwidth*Cin)            if stack_taps     (bf16 / mxu dtype)
    # b_ref:   (Cout, 1) f32
    # hj_hbm:  (B, Cin, T + 2*pad) raw HBM ref (memory_space=pl.ANY), already padded
    # hi_ref / out_ref: (1, Cout, TT)
    # xbuf:    VMEM (Cin, TT + 2*pad) scratch, sem: DMA semaphore
    if add_hi:
        hi_ref, out_ref, xbuf, sem = rest
    else:
        out_ref, xbuf, sem = rest

    b = pl.program_id(0)
    t = pl.program_id(1)
    start = t * tt
    if tt % 128 == 0:
        start = pl.multiple_of(start, 128)

    # Fetch this tile's halo'd input window (HBM -> VMEM).
    cp = pltpu.make_async_copy(
        hj_hbm.at[b, :, pl.ds(start, tt + 2 * pad)], xbuf, sem)
    cp.start()

    C = out_ref.shape[1]
    # Start the accumulator from bias (+ hi) while the DMA is in flight.
    if add_hi:
        acc = hi_ref[0].astype(jnp.float32) + b_ref[...]
    else:
        acc = jnp.broadcast_to(b_ref[...], (C, tt)).astype(jnp.float32)

    cp.wait()

    if stack_taps:
        # Small C: stack the kwidth lane-shifted windows along the contraction axis so
        # a single MXU matmul with contraction kwidth*C replaces kwidth tiny matmuls.
        x_stack = jnp.concatenate([xbuf[:, k:k + tt] for k in range(kwidth)], axis=0)
        acc = acc + jnp.dot(w_ref[...], x_stack, preferred_element_type=jnp.float32)
    else:
        # Large C: contraction C already fills the MXU; per-tap matmuls, tap offsets
        # are lane-axis shifts of the halo buffer.
        for k in range(kwidth):
            acc = acc + jnp.dot(w_ref[k], xbuf[:, k:k + tt],
                                preferred_element_type=jnp.float32)

    out_ref[0] = acc.astype(out_ref.dtype)


def conv_skip(weight, bias, hj, hi=None, *, kwidth, add_hi=True,
              mxu_dtype=jnp.bfloat16):
    """weight: (kwidth, Cout, Cin), bias: (C,), hj/hi: (B, C, T) -> (B, C, T)."""
    B, C, T = hj.shape
    if kwidth > 1 and kwidth % 2 == 0:
        # TODO(synk): even kwidth with pad=kwidth//2 gives length T+1 in PyTorch.
        raise NotImplementedError("GSkip conv kernel supports odd kwidth (or 1) only")
    pad = kwidth // 2 if kwidth > 1 else 0
    out_dtype = hj.dtype
    out_isz = out_dtype.itemsize
    mxu_isz = jnp.dtype(mxu_dtype).itemsize

    # Stack taps into one big contraction only when C is small (MXU-pass-bound regime).
    stack_taps = (kwidth * C) <= 512

    # bytes/timestep: halo scratch (+ stacked operand if used, single-buffered)
    # + hi/out blocks (double-buffered)
    per_ts = C * mxu_isz
    if stack_taps:
        per_ts += kwidth * C * mxu_isz
    per_ts += C * (2 * 2 if add_hi else 2) * out_isz
    budget = 20 * 1024 * 1024 - kwidth * C * C * mxu_isz
    tt = _pick_time_tile(T, per_ts, budget)
    nT = T // tt

    # Single HBM pass on hj: cast to the MXU dtype + 'same' pad (no transposes anywhere).
    hj_pad = jnp.pad(hj.astype(mxu_dtype), ((0, 0), (0, 0), (pad, pad)))
    bias2d = bias.reshape(C, 1).astype(jnp.float32)

    if stack_taps:
        # (kwidth, Cout, Cin) -> (Cout, kwidth*Cin); column block k == weight[k].
        w = jnp.transpose(weight, (1, 0, 2)).reshape(C, kwidth * C).astype(mxu_dtype)
        w_spec = pl.BlockSpec((C, kwidth * C), lambda b, t: (0, 0))
    else:
        w = weight.astype(mxu_dtype)                       # (kwidth, Cout, Cin)
        w_spec = pl.BlockSpec((kwidth, C, C), lambda b, t: (0, 0, 0))

    in_specs = [
        w_spec,
        pl.BlockSpec((C, 1), lambda b, t: (0, 0)),
        pl.BlockSpec(memory_space=pl.ANY),       # padded hj stays in HBM; manual DMA
    ]
    args = [w, bias2d, hj_pad]
    if add_hi:
        in_specs.append(pl.BlockSpec((1, C, tt), lambda b, t: (b, 0, t)))
        args.append(hi)

    kernel = functools.partial(_conv_skip_kernel, kwidth=kwidth, pad=pad,
                               tt=tt, add_hi=add_hi, stack_taps=stack_taps)

    cost = pl.CostEstimate(
        flops=int(2 * B * T * C * C * kwidth),
        transcendentals=0,
        bytes_accessed=int(B * C * (T + 2 * pad) * mxu_isz
                           + (2 if add_hi else 1) * B * C * T * out_isz
                           + kwidth * C * C * mxu_isz))

    return pl.pallas_call(
        kernel,
        out_shape=jax.ShapeDtypeStruct((B, C, T), out_dtype),
        grid_spec=pltpu.PrefetchScalarGridSpec(
            num_scalar_prefetch=0,
            grid=(B, nT),
            in_specs=in_specs,
            out_specs=pl.BlockSpec((1, C, tt), lambda b, t: (b, 0, t)),
            scratch_shapes=[
                pltpu.VMEM((C, tt + 2 * pad), mxu_dtype),   # halo'd input window
                pltpu.SemaphoreType.DMA(()),
            ],
        ),
        compiler_params=pltpu.CompilerParams(
            dimension_semantics=("parallel", "parallel"),
            vmem_limit_bytes=_VMEM_LIMIT),
        cost_estimate=cost,
    )(*args)


# ----------------------------------------------------------------------------
# GSkip module wrapper (parameters held as plain arrays)
# ----------------------------------------------------------------------------
class GSkipPallas:
    def __init__(self, skip_type, size, skip_init, skip_dropout=0, merge_mode='sum',
                 kwidth=11, bias=True, mxu_dtype=jnp.bfloat16, key=None):
        self.skip_type = skip_type
        self.merge_mode = merge_mode
        self.kwidth = kwidth
        self.mxu_dtype = mxu_dtype
        key = jax.random.PRNGKey(0) if key is None else key
        if skip_type in ('alpha', 'constant'):
            if skip_init == 'zero':
                self.skip_k = jnp.zeros((size,), jnp.float32)
            elif skip_init == 'randn':
                self.skip_k = jax.random.normal(key, (size,), jnp.float32)
            elif skip_init == 'one':
                self.skip_k = jnp.ones((size,), jnp.float32)
            else:
                raise TypeError('Unrecognized alpha init scheme: ', skip_init)
        elif skip_type == 'conv':
            kw, kb = jax.random.split(key)
            # weight layout (kwidth, Cout, Cin); torch weight is (Cout, Cin, kwidth)
            fan_in = size * kwidth
            bound = 1.0 / (fan_in ** 0.5)
            self.weight = jax.random.uniform(
                kw, (kwidth, size, size), jnp.float32, -bound, bound)
            self.bias = (jax.random.uniform(kb, (size,), jnp.float32, -bound, bound)
                         if bias else jnp.zeros((size,), jnp.float32))
        else:
            raise TypeError('Unrecognized GSkip scheme: ', skip_type)
        # TODO(synk): skip_dropout > 0 (training-mode dropout) not implemented.

    def __call__(self, hj, hi):
        if self.skip_type == 'conv':
            if self.merge_mode == 'sum':
                return conv_skip(self.weight, self.bias, hj, hi,
                                 kwidth=self.kwidth, add_hi=True,
                                 mxu_dtype=self.mxu_dtype)
            elif self.merge_mode == 'concat':
                sk_h = conv_skip(self.weight, self.bias, hj, None,
                                 kwidth=self.kwidth, add_hi=False,
                                 mxu_dtype=self.mxu_dtype)
                return jnp.concatenate((hi, sk_h), axis=1)
        else:
            if self.merge_mode == 'sum':
                return alpha_skip(self.skip_k, hj, hi, add_hi=True)
            elif self.merge_mode == 'concat':
                sk_h = alpha_skip(self.skip_k, hj, None, add_hi=False)
                return jnp.concatenate((hi, sk_h), axis=1)
        raise TypeError('Unrecognized skip merge mode: ', self.merge_mode)


# ----------------------------------------------------------------------------
# plain-JAX references for the correctness sanity check
# ----------------------------------------------------------------------------
def _ref_alpha_sk(alpha, hj):
    return alpha[None, :, None] * hj


def _ref_conv_sk(weight, bias, hj, kwidth):
    pad = kwidth // 2 if kwidth > 1 else 0
    w_oik = jnp.transpose(weight, (1, 2, 0))        # (kwidth,Cout,Cin) -> (Cout,Cin,K)
    out = lax.conv_general_dilated(
        hj, w_oik, window_strides=(1,), padding=((pad, pad),),
        dimension_numbers=('NCH', 'OIH', 'NCH'),
        precision=lax.Precision.HIGHEST)
    return out + bias[None, :, None]


if __name__ == "__main__":
    key = jax.random.PRNGKey(0)
    k1, k2, k3, k4, k5 = jax.random.split(key, 5)

    B, C, T = 2, 16, 1536          # T picked so the time axis tiles (TT=512, 3 tiles)
    kwidth = 11

    hj = jax.random.normal(k1, (B, C, T), jnp.float32)
    hi = jax.random.normal(k2, (B, C, T), jnp.float32)

    # --- alpha skip, merge='sum' ---
    mod_alpha = GSkipPallas('alpha', C, 'randn', merge_mode='sum', key=k3)
    out_alpha = jax.block_until_ready(mod_alpha(hj, hi))
    ref_alpha = _ref_alpha_sk(mod_alpha.skip_k, hj) + hi
    assert out_alpha.shape == (B, C, T)
    assert jnp.allclose(out_alpha, ref_alpha, atol=1e-5), "alpha sum mismatch"

    # --- constant skip, merge='concat' ---
    mod_cc = GSkipPallas('constant', C, 'one', merge_mode='concat', key=k3)
    out_cc = jax.block_until_ready(mod_cc(hj, hi))
    assert out_cc.shape == (B, 2 * C, T)
    assert jnp.allclose(out_cc[:, :C], hi, atol=1e-6), "concat hi half mismatch"
    assert jnp.allclose(out_cc[:, C:], hj, atol=1e-5), "concat sk_h half mismatch"

    # --- conv skip, merge='sum' (small C -> stacked-tap MXU path) ---
    mod_conv = GSkipPallas('conv', C, None, merge_mode='sum',
                           kwidth=kwidth, bias=True, key=k3)
    out_conv = jax.block_until_ready(mod_conv(hj, hi))
    # reference sees the identically bf16-rounded operands, f32 math
    hj_q = hj.astype(jnp.bfloat16).astype(jnp.float32)
    w_q = mod_conv.weight.astype(jnp.bfloat16).astype(jnp.float32)
    ref_sk = _ref_conv_sk(w_q, mod_conv.bias, hj_q, kwidth)
    assert out_conv.shape == (B, C, T)
    assert jnp.allclose(out_conv, ref_sk + hi, atol=2e-3, rtol=2e-3), "conv sum mismatch"

    # --- conv skip, merge='concat' (small C) ---
    mod_ccv = GSkipPallas('conv', C, None, merge_mode='concat',
                          kwidth=kwidth, bias=True, key=k3)
    out_ccv = jax.block_until_ready(mod_ccv(hj, hi))
    assert out_ccv.shape == (B, 2 * C, T)
    assert jnp.allclose(out_ccv[:, :C], hi, atol=1e-6), "conv concat hi half mismatch"
    assert jnp.allclose(out_ccv[:, C:], ref_sk, atol=2e-3, rtol=2e-3), \
        "conv concat sk_h half mismatch"

    # --- conv skip, merge='sum', wide channels (per-tap MXU path) ---
    C2, T2 = 128, 512
    hj2 = jax.random.normal(k4, (1, C2, T2), jnp.float32)
    hi2 = jax.random.normal(k5, (1, C2, T2), jnp.float32)
    mod_wide = GSkipPallas('conv', C2, None, merge_mode='sum',
                           kwidth=kwidth, bias=True, key=k3)
    out_wide = jax.block_until_ready(mod_wide(hj2, hi2))
    hj2_q = hj2.astype(jnp.bfloat16).astype(jnp.float32)
    w2_q = mod_wide.weight.astype(jnp.bfloat16).astype(jnp.float32)
    ref_wide = _ref_conv_sk(w2_q, mod_wide.bias, hj2_q, kwidth) + hi2
    assert out_wide.shape == (1, C2, T2)
    assert jnp.allclose(out_wide, ref_wide, atol=3e-3, rtol=3e-3), \
        "wide conv sum mismatch"

    print("KERNEL_OK")
</pallas_src>

<mosaic_0001>
module attributes {stable_mosaic.version = 11 : i64} {
  func.func @_alpha_kernel_sum(%arg0: i32, %arg1: i32, %arg2: memref<16x1xf32, #tpu.memory_space<vmem>>, %arg3: memref<1x16x512xf32, #tpu.memory_space<vmem>>, %arg4: memref<1x16x512xf32, #tpu.memory_space<vmem>>, %arg5: memref<1x16x512xf32, #tpu.memory_space<vmem>>) attributes {dimension_semantics = [#tpu.dimension_semantics<parallel>, #tpu.dimension_semantics<parallel>], iteration_bounds = array<i64: 2, 3>, scalar_prefetch = 0 : i64, scratch_operands = 0 : i64, tpu.core_type = #tpu.core_type<tc>, window_params = [{pipeline_mode = #tpu.pipeline_mode<synchronous>, transform_indices = @transform_0, window_bounds = array<i64: 16, 1>}, {transform_indices = @transform_1, window_bounds = array<i64: 1, 16, 512>}, {transform_indices = @transform_2, window_bounds = array<i64: 1, 16, 512>}, {transform_indices = @transform_3, window_bounds = array<i64: 1, 16, 512>}]} {
    %c0 = arith.constant 0 : index
    %c0_0 = arith.constant 0 : index
    %0 = vector.load %arg2[%c0, %c0_0] : memref<16x1xf32, #tpu.memory_space<vmem>>, vector<16x1xf32>
    %c0_1 = arith.constant 0 : index
    %c0_2 = arith.constant 0 : index
    %c0_3 = arith.constant 0 : index
    %1 = vector.load %arg3[%c0_1, %c0_2, %c0_3] : memref<1x16x512xf32, #tpu.memory_space<vmem>>, vector<1x16x512xf32>
    %2 = vector.shape_cast %1 : vector<1x16x512xf32> to vector<16x512xf32>
    %3 = vector.broadcast %0 : vector<16x1xf32> to vector<16x512xf32>
    %4 = arith.mulf %3, %2 : vector<16x512xf32>
    %c0_4 = arith.constant 0 : index
    %c0_5 = arith.constant 0 : index
    %c0_6 = arith.constant 0 : index
    %5 = vector.load %arg4[%c0_4, %c0_5, %c0_6] : memref<1x16x512xf32, #tpu.memory_space<vmem>>, vector<1x16x512xf32>
    %6 = vector.shape_cast %5 : vector<1x16x512xf32> to vector<16x512xf32>
    %7 = arith.addf %4, %6 : vector<16x512xf32>
    %c0_7 = arith.constant 0 : index
    %c0_8 = arith.constant 0 : index
    %c0_9 = arith.constant 0 : index
    %8 = vector.load %arg5[%c0_7, %c0_8, %c0_9] : memref<1x16x512xf32, #tpu.memory_space<vmem>>, vector<1x16x512xf32>
    %9 = vector.shape_cast %8 : vector<1x16x512xf32> to vector<16x512xf32>
    %10 = vector.shape_cast %7 : vector<16x512xf32> to vector<1x16x512xf32>
    tpu.vector_store %arg5[%c0_7, %c0_8, %c0_9], %10 {strides = array<i32>} : memref<1x16x512xf32, #tpu.memory_space<vmem>>, vector<1x16x512xf32>,
    return
  }
  func.func @transform_0(%arg0: i32, %arg1: i32) -> (i32, i32) {
    %c0_i32 = arith.constant 0 : i32
    %c0_i32_0 = arith.constant 0 : i32
    %c0_i32_1 = arith.constant 0 : i32
    return %c0_i32, %c0_i32_0 : i32, i32
  }
  func.func @transform_1(%arg0: i32, %arg1: i32) -> (i32, i32, i32) {
    %c0_i32 = arith.constant 0 : i32
    %c0_i32_0 = arith.constant 0 : i32
    return %arg0, %c0_i32, %arg1 : i32, i32, i32
  }
  func.func @transform_2(%arg0: i32, %arg1: i32) -> (i32, i32, i32) {
    %c0_i32 = arith.constant 0 : i32
    %c0_i32_0 = arith.constant 0 : i32
    return %arg0, %c0_i32, %arg1 : i32, i32, i32
  }
  func.func @transform_3(%arg0: i32, %arg1: i32) -> (i32, i32, i32) {
    %c0_i32 = arith.constant 0 : i32
    %c0_i32_0 = arith.constant 0 : i32
    return %arg0, %c0_i32, %arg1 : i32, i32, i32
  }
}

</mosaic_0001>

<bundles_post_ra>
// kernel: tpu_custom_call.1
= control target key start
LH: loop header
LB: loop body
LE: loop exit
PB: predicated region body
PF: predicated region fallthrough
CT: control target
= control target key end

     0   :  { %s983_s0 = inlined_call_operand.vmem [shape: f32[16,1], index: 0, kind: input, shape index: {}]   ;;  %s984_s1 = inlined_call_operand.hbm [shape: f32[2,16,1536], index: 1, kind: input, shape index: {}]   ;;  %s985_s2 = inlined_call_operand.hbm [shape: f32[2,16,1536], index: 2, kind: input, shape index: {}]   ;;  %s986_s3 = inlined_call_operand.hbm [shape: f32[2,16,1536], index: 3, kind: output, shape index: {}]  }
   0x1   :  { %992 = sst [smem:[#allocation15_spill]] %s984_s1 }
   0x2   :  { %8 = vsyncpa [#allocation3], 0 }
   0x3   :  { %10 = vsyncpa [#allocation3 + $0x1], 0 }
   0x4   :  { %11 = vsyncpa [#allocation6], 0 }
   0x5   :  { %13 = vsyncpa [#allocation6 + $0x1], 0 }
   0x6   :  { %14 = vsyncpa [#allocation4], 0 }
   0x7   :  { %16 = vsyncpa [#allocation4 + $0x1], 0  ;;  %s739_s12 = smov 0   ;;  %s741_s13 = smov 0  }
   0x8   :  { %s743_s14 = smov 0   ;;  %s745_s15 = smov 0  }
   0x9   :  { %s747_s16 = smov 0   ;;  %s749_s17 = smov 0  }
   0xa   :  { %s751_s18 = smov 0   ;;  %s753_s19 = smov 0  }
   0xb LB: > { %993 = sst [smem:[#allocation11_spill]] %s699_s17  ;;  %s438_s20 = sadd.s32 4294967295, %s707_s19   ;;  %s707_s19 = sphi %s753_s19, %s22_s19   ;;  %s703_s18 = sphi %s751_s18, %s1008_s18   ;;  %s699_s17 = sphi %s749_s17, %s1007_s17   ;;  %s695_s16 = sphi %s747_s16, %s1006_s16   ;;  %s691_s15 = sphi %s745_s15, %s1005_s15   ;;  %s687_s14 = sphi %s743_s14, %s1011_s14   ;;  %s683_s13 = sphi %s741_s13, %s1010_s13   ;;  %s679_s12 = sphi %s739_s12, %s1009_s12  }
   0xc   : > { %994 = sst [smem:[#allocation12_spill]] %s703_s18  ;;  %s439_s21 = sadd.s32 4294967294, %s707_s19  }
   0xd   : > { %s31_s22 = sadd.s32 1, %s699_s17  ;;  %s34_s23 = sadd.s32 1, %s703_s18 }
   0xe   : > { %p32_p0 = scmp.ge.s32.totalorder %s31_s22, 3  ;;  %s64_s24 = sadd.s32 1, %s687_s14 }
   0xf   : > { %p71_p1 = scmp.ne.s32.totalorder %s687_s14, %s683_s13  ;;  %p72_p2 = scmp.eq.s32.totalorder %s707_s19, 0 }
  0x10   : > { %s1013_s22 = smov (%p32_p0, %s31_s22), 0  ;;  %s1015_s23 = smov (!%p32_p0, %s34_s23), %s703_s18 }
  0x11   : > { %995 = sst [smem:[#allocation13_spill]] %s1013_s22  ;;  %s60_s25 = ssub.s32 %s699_s17, %s1013_s22 }
  0x12   : > { %p792_p3 = por %p72_p2, %p71_p1  ;;  %p36_p4 = scmp.ge.s32.totalorder %s1015_s23, 2 }
  0x13   : > { %p77_p5 = scmp.ne.s32.totalorder %s683_s13, %s679_s12  ;;  %p78_p6 = scmp.eq.s32.totalorder %s438_s20, 0 }
  0x14   : > { %p131_p7 = scmp.eq.s32.totalorder %s438_s20, 5  ;;  %s1017_s23 = smov (%p36_p4, %s1015_s23), 0 }
  0x15   : > { %997 = sst [smem:[#allocation14_spill]] %s1017_s23  ;;  %p800_p8 = por %p78_p6, %p77_p5 }
  0x16   : > { %p804_p9 = por %p131_p7, %p71_p1  ;;  %s59_s29 = ssub.s32 %s703_s18, %s1017_s23 }
  0x17   : > { %p137_p10 = scmp.eq.s32.totalorder %s439_s21, 5  ;;  %s61_s30 = sor.u32 %s60_s25, %s59_s29 }
  0x18   : > { %p62_p11 = scmp.eq.s32.totalorder %s61_s30, 0  ;;  %p477_p13 = scmp.lt.s32.totalorder %s707_s19, 6 }
  0x19   : > { %p810_p12 = por %p137_p10, %p77_p5  ;;  %s816_s5 = sand.u32 1, %s687_s14  }
  0x1a   : > { %s819_s6 = scalar_select %p62_p11, %s687_s14, %s64_s24  }
  0x1b   : > { %s988_s7 = sshll.u32 %s816_s5, 6  ;;  %s443_s8 = sshll.u32 %s699_s17, 2 }
  0x1c   : > { %s457_s9 = smul.u32 24, %s703_s18  ;;  %s164_s10 = scalar_lea.vmem [#allocation2], %s988_s7 }
  0x1d   : > { %s173_s11 = sshll.u32 %s164_s10, 4  ;;  %p828_p0 = pnand %p477_p13, %p792_p3  ;;  %s174_s11 = int_to_ptr.vmem [resolvable:$true] %s173_s11 }
  0x1e   : > { %s170_s21 = sadd.s32 %s457_s9, %s443_s8  ;;  %s1002_s1 = sld [smem:[#allocation15_spill]] }
  0x1f   : > { %s444_s25 = sshll.u32 %s170_s21, 7  ;;  %p448_p1 = scmp.ge.s32.totalorder %s707_s19, 1 }
  0x20   : > { %s161_s23 = scalar_lea.sflag [#allocation3], %s816_s5  ;;  %p553_p2 = pneg %p828_p0 }
  0x21   : > { %s564_s7 = scalar_lea.vmem %s174_s11, 1024  ;;  %s709_s26 = smov [#allocation2]  }
  0x22   : > { %p565_p4 = scmp.ne.s32.totalorder %s174_s11, %s564_s7  ;;  %s569_s10 = sshll.u32 %s709_s26, 4  ;;  %s570_s10 = int_to_ptr.vmem [resolvable:$false] %s569_s10 }
  0x23   : > { %s571_s22 = scalar_lea.vmem %s570_s10, 2048  ;;  %p572_p6 = scmp.lt.s32.totalorder %s174_s11, %s570_s10 }
  0x24   : > { %s172_s24 = scalar_lea.hbm %s1002_s1, %s444_s25  ;;  %p567_p3 = pnand %p565_p4, %p553_p2 }
  0x25   : > { %p573_p7 = scmp.lt.s32.totalorder %s571_s22, %s564_s7 }
  0x26   : > { %p568_p5 = pneg %p567_p3 }
  0x27   : > { %p574_p10 = por %p573_p7, %p572_p6 }
  0x29   : > { %p575_p11 = pnand %p574_p10, %p568_p5 }
  0x2b   : > { %578 = shalt.err (!%p575_p11)
}
  0x2c   : > { %s710_s8 = smov 1536   ;;  %s711_s9 = smov 512  }
  0x2d   : > { %s712_s21 = smov 32   ;;  %p204_p13 = scmp.lt.s32.totalorder %s707_s19, 7 }
  0x2e   : > { %469 = dma.hbm_to_vmem [thread:$0]  (!%p828_p0), %s172_s24, 1024, %s174_s11, %s161_s23, %s710_s8, %s711_s9, %s712_s21  }
  0x2f   : > { %s195_s26 = scalar_lea.hbm %s985_s2, %s444_s25  ;;  %p850_p4 = pnand %p448_p1, %p204_p13 }
  0x30   : > { %s1004_s7 = sshll.u32 %s816_s5, 6  ;;  %s184_s18 = scalar_lea.sflag [#allocation6], %s816_s5 }
  0x31   : > { %s187_s10 = scalar_lea.vmem [#allocation5], %s1004_s7  ;;  %s713_s23 = smov [#allocation5]  }
  0x32   : > { %s196_s1 = sshll.u32 %s187_s10, 4  ;;  %s597_s11 = sshll.u32 %s713_s23, 4  ;;  %s197_s1 = int_to_ptr.vmem [resolvable:$true] %s196_s1  ;;  %s598_s11 = int_to_ptr.vmem [resolvable:$false] %s597_s11 }
  0x33   : > { %s592_s17 = scalar_lea.vmem %s197_s1, 1024  ;;  %s599_s25 = scalar_lea.vmem %s598_s11, 2048 }
  0x34   : > { %p593_p3 = scmp.ne.s32.totalorder %s197_s1, %s592_s17  ;;  %p600_p7 = scmp.lt.s32.totalorder %s197_s1, %s598_s11 }
  0x35   : > { %p601_p1 = scmp.lt.s32.totalorder %s599_s25, %s592_s17 }
  0x36   : > { %p595_p5 = pnand %p593_p3, %p553_p2 }
  0x37   : > { %p602_p10 = por %p601_p1, %p600_p7 }
  0x38   : > { %p596_p6 = pneg %p595_p5 }
  0x3a   : > { %p603_p11 = pnand %p602_p10, %p596_p6 }
  0x3c   : > { %606 = shalt.err (!%p603_p11)
}
  0x3d   : > { %472 = dma.hbm_to_vmem [thread:$0]  (!%p828_p0), %s195_s26, 1024, %s197_s1, %s184_s18, %s710_s8, %s711_s9, %s712_s21  }
  0x3e   : > { %208 = sbr.rel (%p850_p4) target bundleno = 220 (0xdc), region = 32  ;;  %s865_s5 = sand.u32 (!%p850_p4), 1, %s683_s13  }
  0x3f   : > { %s868_s24 = sshll.u32 (!%p850_p4), %s865_s5, 6  ;;  %s211_s29 = scalar_lea.sflag (!%p850_p4), [#allocation3], %s865_s5 }
  0x40   : > { %s872_s17 = scalar_lea.vmem (!%p850_p4), [#allocation2], %s868_s24 }
  0x43   : > { %666 = dma.done.wait (%p800_p8), %s211_s29, 1024  }
  0x44   : > { %668 = vsyncadd (%p800_p8), %s211_s29, 4294966272  ;;  %s220_s1 = scalar_lea.sflag [#allocation6], %s865_s5  ;;  %s880_s18 = scalar_lea.vmem [#allocation5], %s868_s24 }
  0x45   : > { %670 = dma.done.wait (%p800_p8), %s220_s1, 1024  }
  0x46   : > { %672 = vsyncadd (%p800_p8), %s220_s1, 4294966272  ;;  %v714_v0 = vmov 0   ;;  %v254_v1 = vld [vmem:[%s983_s0] sm:$0xff]  ;;  %v255_v2 = vld [vmem:[%s983_s0 + $0x8] sm:$0xff]  ;;  %s459_s21 = smul.u32 24, %s695_s16  ;;  %s453_s30 = sshll.u32 %s691_s15, 2 }
  0x47   : > { %550 = vset.pattern.permute.xlu0 %v714_v0  ;;  %v256_v3 = vld [vmem:[%s872_s17] sm:$0xff]  ;;  %v257_v4 = vld [vmem:[%s872_s17 + $0x8] sm:$0xff]  ;;  %v258_v5 = vld [vmem:[%s872_s17 + $0x10] sm:$0xff]  ;;  %s906_s15 = scalar_lea.vmem [#allocation7], %s868_s24  ;;  %s307_s11 = scalar_lea.sflag [#allocation4], %s865_s5 }
  0x48   : > { %266 = vperm.xlu0 %550, %v254_v1   ;;  %v259_v6 = vld [vmem:[%s872_s17 + $0x18] sm:$0xff]  ;;  %v282_v7 = vld [vmem:[%s880_s18] sm:$0xff]  ;;  %v283_v8 = vld [vmem:[%s880_s18 + $0x8] sm:$0xff]  ;;  %s902_s26 = sadd.s32 %s459_s21, %s453_s30  ;;  %s322_s16 = sshll.u32 %s906_s15, 4  ;;  %s917_s16 = int_to_ptr.vmem [resolvable:$true] %s322_s16 }
  0x49   : > { %v284_v9 = vld [vmem:[%s880_s18 + $0x10] sm:$0xff]  ;;  %v285_v10 = vld [vmem:[%s880_s18 + $0x18] sm:$0xff]  ;;  %v260_v16 = vld [vmem:[%s872_s17 + $0x20] sm:$0xff]  ;;  %s454_s22 = sshll.u32 %s902_s26, 7  ;;  %s607_s25 = scalar_lea.vmem %s917_s16, 1024 }
  0x4a   : > { %v261_v17 = vld [vmem:[%s872_s17 + $0x28] sm:$0xff]  ;;  %v262_v18 = vld [vmem:[%s872_s17 + $0x30] sm:$0xff]  ;;  %v263_v19 = vld [vmem:[%s872_s17 + $0x38] sm:$0xff]  ;;  %s926_s23 = scalar_lea.hbm %s986_s3, %s454_s22  ;;  %p608_p8 = scmp.ne.s32.totalorder %s917_s16, %s607_s25 }
  0x4b   : > { %v286_v24 = vld [vmem:[%s880_s18 + $0x20] sm:$0xff]  ;;  %v287_v25 = vld [vmem:[%s880_s18 + $0x28] sm:$0xff]  ;;  %v288_v26 = vld [vmem:[%s880_s18 + $0x30] sm:$0xff]  ;;  %s715_s24 = smov [#allocation7]  }
  0x4c   : > { %271 = vperm.xlu0 %550, %v255_v2   ;;  %v289_v27 = vld [vmem:[%s880_s18 + $0x38] sm:$0xff]  ;;  %p609_p0 = pnand %p608_p8, %p804_p9  ;;  %s611_s29 = sshll.u32 %s715_s24, 4  ;;  %s612_s29 = int_to_ptr.vmem [resolvable:$false] %s611_s29 }
  0x4d   : > { %s613_s17 = scalar_lea.vmem %s612_s29, 2048  ;;  %p614_p13 = scmp.lt.s32.totalorder %s917_s16, %s612_s29 }
  0x4e   : > { %p610_p2 = pneg %p609_p0  ;;  %p615_p4 = scmp.lt.s32.totalorder %s613_s17, %s607_s25 }
  0x50   : > { %p616_p3 = por %p615_p4, %p614_p13 }
  0x52   : > { %p617_p5 = pnand %p616_p3, %p610_p2 }
  0xc3   : > { %v267_v11 = vpop.permute.xlu0 %266 }
  0xc4   : > { %v274_v12 = vmul.f32 %v267_v11, %v256_v3  ;;  %v275_v13 = vmul.f32 %v267_v11, %v257_v4  ;;  %v276_v14 = vmul.f32 %v267_v11, %v258_v5  ;;  %v277_v15 = vmul.f32 %v267_v11, %v259_v6 }
  0xc6   : > { %v290_v20 = vadd.f32 %v282_v7, %v274_v12  ;;  %v291_v21 = vadd.f32 %v283_v8, %v275_v13  ;;  %v292_v22 = vadd.f32 %v284_v9, %v276_v14  ;;  %v293_v23 = vadd.f32 %v285_v10, %v277_v15 }
  0xc7   : > { %v272_v28 = vpop.permute.xlu0 %271 }
  0xc8   : > { %298 = vst [vmem:[%s906_s15] sm:$0xff] %v290_v20  ;;  %299 = vst [vmem:[%s906_s15 + $0x8] sm:$0xff] %v291_v21  ;;  %v278_v29 = vmul.f32 %v272_v28, %v260_v16  ;;  %v279_v30 = vmul.f32 %v272_v28, %v261_v17  ;;  %v280_v31 = vmul.f32 %v272_v28, %v262_v18 }
  0xc9   : > { %300 = vst [vmem:[%s906_s15 + $0x10] sm:$0xff] %v292_v22  ;;  %301 = vst [vmem:[%s906_s15 + $0x18] sm:$0xff] %v293_v23  ;;  %v281_v32 = vmul.f32 %v272_v28, %v263_v19 }
  0xca   : > { %v294_v33 = vadd.f32 %v286_v24, %v278_v29  ;;  %v295_v34 = vadd.f32 %v287_v25, %v279_v30  ;;  %v296_v35 = vadd.f32 %v288_v26, %v280_v31 }
  0xcb   : > { %v297_v36 = vadd.f32 %v289_v27, %v281_v32 }
  0xcc   : > { %302 = vst [vmem:[%s906_s15 + $0x20] sm:$0xff] %v294_v33  ;;  %303 = vst [vmem:[%s906_s15 + $0x28] sm:$0xff] %v295_v34 }
  0xcd   : > { %304 = vst [vmem:[%s906_s15 + $0x30] sm:$0xff] %v296_v35  ;;  %305 = vst [vmem:[%s906_s15 + $0x38] sm:$0xff] %v297_v36 }
  0xce   : > { %620 = shalt.err (!%p617_p5)
}
  0xcf   : > { %s621_s1 = scalar_lea.hbm %s926_s23, 1024  ;;  %s625_s8 = scalar_lea.hbm %s986_s3, 6144 }
  0xd0   : > { %p622_p6 = scmp.ne.s32.totalorder %s926_s23, %s621_s1  ;;  %p626_p10 = scmp.lt.s32.totalorder %s926_s23, %s986_s3 }
  0xd1   : > { %p627_p11 = scmp.lt.s32.totalorder %s625_s8, %s621_s1 }
  0xd2   : > { %p623_p7 = pnand %p622_p6, %p804_p9 }
  0xd3   : > { %p628_p8 = por %p627_p11, %p626_p10 }
  0xd4   : > { %p624_p1 = pneg %p623_p7 }
  0xd6   : > { %p629_p0 = pnand %p628_p8, %p624_p1 }
  0xd8   : > { %632 = shalt.err (!%p629_p0)
}
  0xd9   : > { %s716_s21 = smov 512   ;;  %s717_s30 = smov 1536  }
  0xda   : > { %s718_s26 = smov 32  }
  0xdb   : > { %464 = dma.vmem_to_hbm [thread:$0]  (%p804_p9), %s917_s16, 1024, %s926_s23, %s307_s11, %s716_s21, %s717_s30, %s718_s26  }
  0xdc PF: > { %p478_p2 = scmp.ge.s32.totalorder %s707_s19, 2  ;;  %s337_s15 = sand.u32 1, %s679_s12  }
  0xdd   : > { %s338_s22 = scalar_lea.sflag [#allocation4], %s337_s15 }
  0xde   : > { %p474_p13 = pnand %p478_p2, %p810_p12 }
  0xe0   : > { %p475_p4 = pneg %p474_p13 }
  0xe2   : > { %674 = dma.done.wait (%p475_p4), %s338_s22, 1024  }
  0xe3   : > { %676 = vsyncadd (%p475_p4), %s338_s22, 4294966272  ;;  %s22_s19 = sadd.s32 1, %s707_s19   ;;  %s1005_s15 = sld [smem:[#allocation11_spill]] }
  0xe4   : > { %p19_p3 = scmp.ge.s32.totalorder %s22_s19, 8   ;;  %s1006_s16 = sld [smem:[#allocation12_spill]] }
  0xe5   : > { %s1007_s17 = sld [smem:[#allocation13_spill]]  ;;  %s1009_s12 = smov %s683_s13 }
  0xe6   : > { %s1008_s18 = sld [smem:[#allocation14_spill]]  ;;  %s1010_s13 = smov %s687_s14 }
  0xe7   : > { %s1011_s14 = smov %s819_s6  ;;  %21 = sbr.rel (!%p19_p3) target bundleno = 11 (0xb), region = 90 }
  0xec   :  { %343 = vsyncpa [#allocation3], 1 }
  0xed   :  { %345 = vsyncpa [#allocation3 + $0x1], 1 }
  0xee   :  { %346 = vsyncpa [#allocation6], 1 }
  0xef   :  { %348 = vsyncpa [#allocation6 + $0x1], 1 }
  0xf0   :  { %349 = vsyncpa [#allocation4], 1 }
  0xf1   :  { %351 = vsyncpa [#allocation4 + $0x1], 1 }

</bundles_post_ra>
